<compile_context>
chip_gen: v7x
topology: tpu7x:2x2x1
jax: 0.10.0
libtpu: 0.0.40
codegen_flags: <defaults>
</compile_context>

<pallas_src>
import jax
import jax.numpy as jnp
from jax.experimental import pallas as pl
from jax.experimental.pallas import tpu as pltpu


def _conv_relu_kernel(x_ref, w_ref, b_ref, o_ref):
    # x_ref : (Hout, KH*Wp*Cin)        lowered input rows for one image
    # w_ref : (KH*Wp*Cin, Wout*Cout)   width-Toeplitz lowered weights
    # b_ref : (1, Wout*Cout)           bias tiled across Wout
    # o_ref : (Hout, Wout*Cout)        lane-dense output block
    acc = jnp.dot(x_ref[...], w_ref[...], preferred_element_type=jnp.float32)
    acc = acc + b_ref[...]
    o_ref[...] = jnp.maximum(acc, 0.0).astype(o_ref.dtype)


def conv2d_block_pallas(x_nchw, weight_oihw, bias, *, stride=1, padding=0):
    """Conv2d(bias=True) + ReLU, matching torch.nn.Conv2d NCHW semantics."""
    n, c_in, h, w = x_nchw.shape
    c_out, c_in_w, kh, kw = weight_oihw.shape
    assert c_in == c_in_w

    h_out = (h + 2 * padding - kh) // stride + 1
    w_out = (w + 2 * padding - kw) // stride + 1
    hp, wp = h + 2 * padding, w + 2 * padding
    k_dim = kh * wp * c_in            # MXU contraction dim
    nw_dim = w_out * c_out            # lane-dense fused output dim

    # ---- glue: layout only, no conv arithmetic ------------------------------
    # NCHW -> NHWC, zero pad, fuse (W, Cin) onto the lane axis.
    x_nhwc = jnp.transpose(x_nchw, (0, 2, 3, 1))
    x_pad = jnp.pad(x_nhwc, ((0, 0), (padding, padding), (padding, padding), (0, 0)))
    x_packed = x_pad.reshape(n, hp, wp * c_in)
    # Pre-extract the KH stride-phase rows so the kernel never does strided /
    # sublane-offset slicing:  xr[b, h, kh*Wp*Cin + j] = x_packed[b, h*stride + kh, j]
    rows = jnp.arange(kh)[:, None] + jnp.arange(h_out)[None, :] * stride    # (KH, Hout)
    xr = x_packed[:, rows, :]                                  # (N, KH, Hout, Wp*Cin)
    xr = jnp.transpose(xr, (0, 2, 1, 3)).reshape(n, h_out, k_dim)

    # Width-Toeplitz weight lowering:
    #   B[kh*Wp*Cin + wp*Cin + ci, w*Cout + co] = W[kh, wp - w*stride, ci, co]
    #   (zero when wp - w*stride is outside [0, KW)).
    w_hwio = jnp.transpose(weight_oihw, (2, 3, 1, 0))          # (KH, KW, Cin, Cout)
    kw_off = jnp.arange(wp)[:, None] - jnp.arange(w_out)[None, :] * stride  # (Wp, Wout)
    valid = (kw_off >= 0) & (kw_off < kw)
    kw_idx = jnp.clip(kw_off, 0, kw - 1)
    b4 = jnp.where(valid[None, :, :, None, None],
                   w_hwio[:, kw_idx],                          # (KH, Wp, Wout, Cin, Cout)
                   0.0)
    b_mat = jnp.transpose(b4, (0, 1, 3, 2, 4)).reshape(k_dim, nw_dim)
    bias_row = jnp.tile(bias, w_out).reshape(1, nw_dim)

    # ---- Pallas hot path -----------------------------------------------------
    flops = 2 * n * h_out * k_dim * nw_dim
    bytes_accessed = 4 * (xr.size + b_mat.size + bias_row.size + n * h_out * nw_dim)

    out_flat = pl.pallas_call(
        _conv_relu_kernel,
        out_shape=jax.ShapeDtypeStruct((n, h_out, nw_dim), x_nchw.dtype),
        grid_spec=pltpu.PrefetchScalarGridSpec(
            num_scalar_prefetch=0,
            grid=(n,),
            in_specs=[
                pl.BlockSpec((pl.Squeezed(), h_out, k_dim), lambda b: (b, 0, 0)),
                pl.BlockSpec((k_dim, nw_dim), lambda b: (0, 0)),
                pl.BlockSpec((1, nw_dim), lambda b: (0, 0)),
            ],
            out_specs=pl.BlockSpec((pl.Squeezed(), h_out, nw_dim),
                                   lambda b: (b, 0, 0)),
        ),
        compiler_params=pltpu.CompilerParams(
            dimension_semantics=("parallel",),
            vmem_limit_bytes=32 * 1024 * 1024),
        cost_estimate=pl.CostEstimate(flops=flops, transcendentals=0,
                                      bytes_accessed=bytes_accessed),
    )(xr, b_mat, bias_row)

    out_nhwc = out_flat.reshape(n, h_out, w_out, c_out)
    return jnp.transpose(out_nhwc, (0, 3, 1, 2))               # back to NCHW


def kaiming_uniform(key, shape, fan_in):
    # Matches nn.init.kaiming_uniform_(w, nonlinearity='relu'):
    # gain = sqrt(2), bound = gain * sqrt(3 / fan_in)
    bound = (2.0 ** 0.5) * (3.0 / fan_in) ** 0.5
    return jax.random.uniform(key, shape, jnp.float32, -bound, bound)


if __name__ == "__main__":
    key = jax.random.PRNGKey(0)
    k_x, k_w = jax.random.split(key)

    # Conv2dBlock(in_channels=4, out_channels=8, kernel_size=3, stride=1, padding=1)
    N, C_IN, H, W = 2, 4, 16, 16
    C_OUT, K, STRIDE, PAD = 8, 3, 1, 1

    x = jax.random.normal(k_x, (N, C_IN, H, W), jnp.float32)
    weight = kaiming_uniform(k_w, (C_OUT, C_IN, K, K), fan_in=C_IN * K * K)
    bias = jnp.zeros((C_OUT,), jnp.float32)   # nn.init.zeros_(m.bias)

    out = conv2d_block_pallas(x, weight, bias, stride=STRIDE, padding=PAD)
    out = jax.block_until_ready(out)

    # Reference check against XLA conv (same semantics as torch Conv2d NCHW).
    ref = jax.lax.conv_general_dilated(
        x, weight, window_strides=(STRIDE, STRIDE),
        padding=((PAD, PAD), (PAD, PAD)),
        dimension_numbers=("NCHW", "OIHW", "NCHW"))
    ref = jnp.maximum(ref + bias.reshape(1, C_OUT, 1, 1), 0.0)
    assert out.shape == (N, C_OUT, H, W)
    assert jnp.allclose(out, ref, atol=1e-4, rtol=1e-4)

    print("KERNEL_OK")
</pallas_src>

<mosaic_0001>
module attributes {stable_mosaic.version = 11 : i64} {
  func.func @_conv_relu_kernel(%arg0: i32, %arg1: memref<1x16x216xf32, #tpu.memory_space<vmem>>, %arg2: memref<216x128xf32, #tpu.memory_space<vmem>>, %arg3: memref<1x128xf32, #tpu.memory_space<vmem>>, %arg4: memref<1x16x128xf32, #tpu.memory_space<vmem>>) attributes {dimension_semantics = [#tpu.dimension_semantics<parallel>], iteration_bounds = array<i64: 2>, scalar_prefetch = 0 : i64, scratch_operands = 0 : i64, tpu.core_type = #tpu.core_type<tc>, window_params = [{transform_indices = @transform_0, window_bounds = array<i64: 1, 16, 216>}, {pipeline_mode = #tpu.pipeline_mode<synchronous>, transform_indices = @transform_1, window_bounds = array<i64: 216, 128>}, {pipeline_mode = #tpu.pipeline_mode<synchronous>, transform_indices = @transform_2, window_bounds = array<i64: 1, 128>}, {transform_indices = @transform_3, window_bounds = array<i64: 1, 16, 128>}]} {
    %c0 = arith.constant 0 : index
    %c0_0 = arith.constant 0 : index
    %c0_1 = arith.constant 0 : index
    %0 = vector.load %arg1[%c0, %c0_0, %c0_1] : memref<1x16x216xf32, #tpu.memory_space<vmem>>, vector<1x16x216xf32>
    %1 = vector.shape_cast %0 : vector<1x16x216xf32> to vector<16x216xf32>
    %c0_2 = arith.constant 0 : index
    %c0_3 = arith.constant 0 : index
    %2 = vector.load %arg2[%c0_2, %c0_3] : memref<216x128xf32, #tpu.memory_space<vmem>>, vector<216x128xf32>
    %cst = arith.constant dense<0.000000e+00> : vector<16x128xf32>
    %3 = tpu.matmul %1, %2, %cst {dimension_numbers = #tpu.dot_dimension_numbers<[1], [0], [0], [1], [0, 0, 1, 1], [], []>} : vector<16x216xf32>, vector<216x128xf32>, vector<16x128xf32> -> vector<16x128xf32>
    %c0_4 = arith.constant 0 : index
    %c0_5 = arith.constant 0 : index
    %4 = vector.load %arg3[%c0_4, %c0_5] : memref<1x128xf32, #tpu.memory_space<vmem>>, vector<1x128xf32>
    %5 = vector.broadcast %4 : vector<1x128xf32> to vector<16x128xf32>
    %6 = arith.addf %3, %5 : vector<16x128xf32>
    %cst_6 = arith.constant 0.000000e+00 : f32
    %7 = vector.broadcast %cst_6 : f32 to vector<16x128xf32>
    %8 = arith.maximumf %6, %7 : vector<16x128xf32>
    %c0_7 = arith.constant 0 : index
    %c0_8 = arith.constant 0 : index
    %c0_9 = arith.constant 0 : index
    %9 = vector.load %arg4[%c0_7, %c0_8, %c0_9] : memref<1x16x128xf32, #tpu.memory_space<vmem>>, vector<1x16x128xf32>
    %10 = vector.shape_cast %9 : vector<1x16x128xf32> to vector<16x128xf32>
    %11 = vector.shape_cast %8 : vector<16x128xf32> to vector<1x16x128xf32>
    tpu.vector_store %arg4[%c0_7, %c0_8, %c0_9], %11 {strides = array<i32>} : memref<1x16x128xf32, #tpu.memory_space<vmem>>, vector<1x16x128xf32>,
    return
  }
  func.func @transform_0(%arg0: i32) -> (i32, i32, i32) {
    %c0_i32 = arith.constant 0 : i32
    %c0_i32_0 = arith.constant 0 : i32
    %c0_i32_1 = arith.constant 0 : i32
    return %arg0, %c0_i32, %c0_i32_0 : i32, i32, i32
  }
  func.func @transform_1(%arg0: i32) -> (i32, i32) {
    %c0_i32 = arith.constant 0 : i32
    %c0_i32_0 = arith.constant 0 : i32
    %c0_i32_1 = arith.constant 0 : i32
    return %c0_i32, %c0_i32_0 : i32, i32
  }
  func.func @transform_2(%arg0: i32) -> (i32, i32) {
    %c0_i32 = arith.constant 0 : i32
    %c0_i32_0 = arith.constant 0 : i32
    %c0_i32_1 = arith.constant 0 : i32
    return %c0_i32, %c0_i32_0 : i32, i32
  }
  func.func @transform_3(%arg0: i32) -> (i32, i32, i32) {
    %c0_i32 = arith.constant 0 : i32
    %c0_i32_0 = arith.constant 0 : i32
    %c0_i32_1 = arith.constant 0 : i32
    return %arg0, %c0_i32, %c0_i32_0 : i32, i32, i32
  }
}

</mosaic_0001>

<bundles_post_ra>
// kernel: tpu_custom_call.1
= control target key start
LH: loop header
LB: loop body
LE: loop exit
PB: predicated region body
PF: predicated region fallthrough
CT: control target
= control target key end

     0   :  { %8 = vsyncpa [#allocation3], 0  ;;  %s976_s0 = inlined_call_operand.hbm [shape: f32[2,16,216], index: 0, kind: input, shape index: {}]   ;;  %s977_s1 = inlined_call_operand.hbm [shape: f32[216,128], index: 1, kind: input, shape index: {}]   ;;  %s978_s2 = inlined_call_operand.vmem [shape: f32[1,128], index: 2, kind: input, shape index: {}]   ;;  %s979_s3 = inlined_call_operand.hbm [shape: f32[2,16,128], index: 3, kind: output, shape index: {}]  }
   0x1   :  { %10 = vsyncpa [#allocation3 + $0x1], 0 }
   0x2   :  { %11 = vsyncpa [#allocation6], 0 }
   0x3   :  { %12 = vsyncpa [#allocation4], 0 }
   0x4   :  { %14 = vsyncpa [#allocation4 + $0x1], 0  ;;  %s739_s12 = smov 0   ;;  %s741_s13 = smov 0  }
   0x5   :  { %s743_s14 = smov 0   ;;  %s745_s15 = smov 0  }
   0x6 LB: > { %s760_s16 = sadd.s32 4294967295, %s706_s15   ;;  %s425_s17 = sadd.s32 4294967294, %s706_s15   ;;  %s706_s15 = sphi %s745_s15, %s999_s15   ;;  %s702_s14 = sphi %s743_s14, %s998_s14   ;;  %s698_s13 = sphi %s741_s13, %s997_s13   ;;  %s694_s12 = sphi %s739_s12, %s996_s12  }
   0x7   : > { %p40_p0 = scmp.ne.s32.totalorder %s698_s13, %s694_s12  ;;  %p980_p1 = scmp.eq.s32.totalorder %s760_s16, 0 }
   0x8   : > { %p112_p3 = scmp.eq.s32.totalorder %s425_s17, 1  ;;  %p426_p5 = scmp.ge.s32.totalorder %s706_s15, 1 }
   0x9   : > { %p769_p4 = por %p980_p1, %p40_p0  ;;  %p119_p7 = scmp.lt.s32.totalorder %s706_s15, 3 }
   0xa   : > { %p774_p6 = por %p112_p3, %p40_p0  ;;  %s708_s21 = smov [#allocation5]  }
   0xb   : > { %s983_s18 = scalar_select %p769_p4, 1, 0 }
   0xc   : > { %s984_s19 = scalar_select %p774_p6, 1, 0 }
   0xd   : > { %p779_p8 = pnand %p426_p5, %p119_p7  ;;  %s131_s22 = sshll.u32 %s708_s21, 4  ;;  %s783_s22 = int_to_ptr.vmem [resolvable:$true] %s131_s22 }
   0xe   : > { %s795_s24 = sadd.s32 1, %s706_s15   ;;  %s27_s25 = sadd.s32 1, %s702_s14 }
   0xf   : > { %s985_s20 = scalar_select %p779_p8, 1, 0 }
  0x10   : > { %p521_p9 = pneg %p779_p8  ;;  %s24_s26 = ssub.s32 %s706_s15, %s795_s24 }
  0x11   : > { %s578_s29 = scalar_lea.hbm %s977_s1, 3456 }
  0x12   : > { %p790_p11 = pnand %p521_p9, %p980_p1  ;;  %p579_p12 = scmp.ne.s32.totalorder %s977_s1, %s578_s29 }
  0x13   : > { %p585_p5 = scmp.lt.u32.totalorder %s578_s29, %s977_s1 }
  0x14   : > { %p580_p13 = pneg %p790_p11 }
  0x16   : > { %p581_p0 = pnand %p580_p13, %p579_p12 }
  0x18   : > { %p582_p3 = pneg %p581_p0 }
  0x1a   : > { %p587_p7 = pnand %p585_p5, %p582_p3 }
  0x1c   : > { %590 = shalt.err (!%p587_p7)
}
  0x1d   : > { %s591_s7 = scalar_lea.vmem %s783_s22, 3456  ;;  %p599_p2 = scmp.lt.s32.totalorder %s783_s22, %s783_s22 }
  0x1e   : > { %p592_p9 = scmp.ne.s32.totalorder %s783_s22, %s591_s7  ;;  %p600_p6 = scmp.lt.s32.totalorder %s591_s7, %s591_s7 }
  0x20   : > { %p594_p10 = pnand %p592_p9, %p580_p13  ;;  %p601_p4 = por %p600_p6, %p599_p2 }
  0x22   : > { %p595_p1 = pneg %p594_p10 }
  0x24   : > { %p602_p8 = pnand %p601_p4, %p595_p1 }
  0x26   : > { %605 = shalt.err (!%p602_p8)
}
  0x27   : > { %s709_s8 = smov 128   ;;  %s710_s9 = smov 8  }
  0x28   : > { %524 = dma.hbm_to_vmem [thread:$0]  (!%p790_p11), %s977_s1, 3456, %s783_s22, [#allocation6], %s709_s8, %s709_s8, %s710_s9  }
  0x29   : > { %p25_p2 = scmp.eq.s32.totalorder %s24_s26, 0  ;;  %p34_p1 = scmp.ne.s32.totalorder %s702_s14, %s698_s13 }
  0x2a   : > { %p35_p4 = scmp.eq.s32.totalorder %s706_s15, 0  ;;  %p534_p6 = scmp.lt.s32.totalorder %s706_s15, 2 }
  0x2b   : > { %s826_s17 = scalar_select %p25_p2, %s702_s14, %s27_s25  }
  0x2c   : > { %p36_p8 = por %p35_p4, %p34_p1  ;;  %p987_p10 = scmp.eq.s32.totalorder %s760_s16, 1 }
  0x2d   : > { %s148_s27 = sand.u32 1, %s702_s14   ;;  %s444_s28 = sshll.u32 %s706_s15, 9 }
  0x2e   : > { %p830_p12 = por %p987_p10, %p34_p1  ;;  %s429_s29 = sshll.u32 %s148_s27, 5 }
  0x2f   : > { %s839_s4 = scalar_lea.hbm %s976_s0, %s444_s28  ;;  %s152_s22 = scalar_lea.vmem [#allocation2], %s429_s29 }
  0x30   : > { %s159_s25 = sshll.u32 %s152_s22, 4  ;;  %p841_p11 = pnand %p534_p6, %p36_p8  ;;  %s845_s25 = int_to_ptr.vmem [resolvable:$true] %s159_s25 }
  0x31   : > { %s847_s5 = scalar_lea.sflag [#allocation3], %s148_s27  ;;  %s606_s6 = scalar_lea.hbm %s839_s4, 512 }
  0x32   : > { %p607_p13 = scmp.ne.s32.totalorder %s839_s4, %s606_s6  ;;  %p608_p0 = pneg %p841_p11 }
  0x33   : > { %s611_s9 = scalar_lea.hbm %s976_s0, 1024  ;;  %p612_p7 = scmp.lt.u32.totalorder %s839_s4, %s976_s0 }
  0x34   : > { %p609_p3 = pnand %p608_p0, %p607_p13  ;;  %p613_p9 = scmp.lt.u32.totalorder %s611_s9, %s606_s6 }
  0x35   : > { %p615_p1 = scmp.lt.u32.totalorder %s606_s6, %s839_s4 }
  0x36   : > { %p610_p5 = pneg %p609_p3  ;;  %p614_p2 = por %p613_p9, %p612_p7 }
  0x38   : > { %p616_p4 = por %p615_p1, %p614_p2 }
  0x3a   : > { %p617_p6 = pnand %p616_p4, %p610_p5 }
  0x3c   : > { %620 = shalt.err (!%p617_p6)
}
  0x3d   : > { %s621_s27 = scalar_lea.vmem %s845_s25, 512  ;;  %s711_s28 = smov [#allocation2]  }
  0x3e   : > { %p622_p8 = scmp.ne.s32.totalorder %s845_s25, %s621_s27  ;;  %s626_s29 = sshll.u32 %s711_s28, 4  ;;  %s627_s29 = int_to_ptr.vmem [resolvable:$false] %s626_s29 }
  0x3f   : > { %s628_s23 = scalar_lea.vmem %s627_s29, 1024  ;;  %p629_p3 = scmp.lt.s32.totalorder %s845_s25, %s627_s29 }
  0x40   : > { %p624_p10 = pnand %p622_p8, %p608_p0  ;;  %p630_p7 = scmp.lt.s32.totalorder %s628_s23, %s621_s27 }
  0x42   : > { %p625_p13 = pneg %p624_p10  ;;  %p631_p9 = por %p630_p7, %p629_p3 }
  0x44   : > { %p632_p2 = pnand %p631_p9, %p625_p13 }
  0x46   : > { %635 = shalt.err (!%p632_p2)
}
  0x47   : > { %s712_s30 = smov 256   ;;  %s713_s22 = smov 16  }
  0x48   : > { %528 = dma.hbm_to_vmem [thread:$0]  (!%p841_p11), %s839_s4, 512, %s845_s25, %s847_s5, %s712_s30, %s712_s30, %s713_s22  }
  0x49   : > { %p990_p0 = scmp.ne.s32.totalorder %s985_s20, 0 }
  0x4a   : > { %s878_s6 = sand.u32 (!%p990_p0), 1, %s698_s13   ;;  %p991_p5 = scmp.ne.s32.totalorder (!%p990_p0), %s983_s18, 0 }
  0x4b   : > { %171 = sbr.rel (%p990_p0) target bundleno = 373 (0x175), region = 32  ;;  %s433_s7 = sshll.u32 (!%p990_p0), %s878_s6, 5 }
  0x4c   : > { %s174_s8 = scalar_lea.sflag (!%p990_p0), [#allocation3], %s878_s6  ;;  %s882_s9 = scalar_lea.vmem (!%p990_p0), [#allocation2], %s433_s7 }
  0x52   : > { %681 = dma.done.wait (%p991_p5), %s174_s8, 512  }
  0x53   : > { %683 = vsyncadd (%p991_p5), %s174_s8, 4294966784  ;;  %p992_p11 = scmp.eq.s32.totalorder %s760_s16, 0 }
  0x55   : > { %685 = dma.done.wait (%p992_p11), [#allocation6], 3456   ;;  %p993_p1 = pmov %p992_p11 }
  0x56   : > { %v714_v0 = vmov 0.0|0.0   ;;  %v208_v1 = vld [vmem:[#allocation5] sm:$0xff]  ;;  %v209_v2 = vld [vmem:[#allocation5 + $0x8] sm:$0xff]  ;;  %v210_v3 = vld [vmem:[#allocation5 + $0x10] sm:$0xff]  ;;  %vm242_vm0 = vcmask 719872   ;;  %v715_v42 = vmov 0.0  }
  0x57   : > { %687 = vsyncadd (%p993_p1), [#allocation6], 4294963840  ;;  %446 = vmatprep.subr.bf16.mxu0 %v714_v0  ;;  %485 = vmatprep.subr.bf16.mxu1 %v714_v0  ;;  %v447_v4 = vpack.c.bf16 %v209_v2, %v208_v1  ;;  %v211_v5 = vld [vmem:[#allocation5 + $0x18] sm:$0xff]  ;;  %v212_v7 = vld [vmem:[#allocation5 + $0x20] sm:$0xff]  ;;  %s435_s18 = sshll.u32 %s878_s6, 4  ;;  %s445_s5 = sshll.u32 %s760_s16, 8 }
  0x58   : > { %v450_v6 = vpack.c.bf16 %v211_v5, %v210_v3  ;;  %v213_v8 = vld [vmem:[#allocation5 + $0x28] sm:$0xff]  ;;  %v214_v10 = vld [vmem:[#allocation5 + $0x30] sm:$0xff]  ;;  %v215_v11 = vld [vmem:[#allocation5 + $0x38] sm:$0xff]  ;;  %s203_s25 = scalar_lea.vmem [#allocation7], %s435_s18  ;;  %s932_s27 = scalar_lea.hbm %s979_s3, %s445_s5 }
  0x59   : > { %448 = vmatpush1.bf16.msra.mxu0 %v447_v4  ;;  %499 = vmatpush1.bf16.msra.mxu1 %v447_v4  ;;  %v453_v9 = vpack.c.bf16 %v213_v8, %v212_v7  ;;  %v205_v12 = vld [vmem:[%s882_s9 + $0x8] sm:$0xff]  ;;  %v207_v13 = vld [vmem:[%s882_s9 + $0x18] sm:$0xff]  ;;  %v456_v14 = vpack.c.bf16 %v215_v11, %v214_v10  ;;  %v216_v15 = vld [vmem:[#allocation5 + $0x40] sm:$0xff]  ;;  %s342_s26 = sshll.u32 %s203_s25, 4  ;;  %s329_s16 = scalar_lea.sflag [#allocation4], %s878_s6  ;;  %s927_s26 = int_to_ptr.vmem [resolvable:$true] %s342_s26 }
  0x5a   : > { %449 = vmatprep.subr.bf16.mxu0 %v714_v0  ;;  %486 = vmatprep.subr.bf16.mxu1 %v714_v0  ;;  %v217_v16 = vld [vmem:[#allocation5 + $0x48] sm:$0xff]  ;;  %v218_v18 = vld [vmem:[#allocation5 + $0x50] sm:$0xff]  ;;  %v219_v19 = vld [vmem:[#allocation5 + $0x58] sm:$0xff]  ;;  %s636_s28 = scalar_lea.vmem %s927_s26, 256  ;;  %s716_s29 = smov [#allocation7]  }
  0x5b   : > { %437 = vmatprep.mubr.msk.f32.mxu0 %vm242_vm0, %v205_v12  ;;  %438 = vmatprep.mubr.msk.f32.mxu1 %vm242_vm0, %v207_v13  ;;  %v459_v17 = vpack.c.bf16 %v217_v16, %v216_v15  ;;  %v462_v20 = vpack.c.bf16 %v219_v19, %v218_v18  ;;  %v220_v21 = vld [vmem:[#allocation5 + $0x60] sm:$0xff]  ;;  %v221_v22 = vld [vmem:[#allocation5 + $0x68] sm:$0xff]  ;;  %v222_v24 = vld [vmem:[#allocation5 + $0x70] sm:$0xff]  ;;  %p637_p4 = scmp.ne.s32.totalorder %s927_s26, %s636_s28  ;;  %s640_s23 = sshll.u32 %s716_s29, 4  ;;  %s641_s23 = int_to_ptr.vmem [resolvable:$false] %s640_s23 }
  0x5c   : > { %v465_v23 = vpack.c.bf16 %v221_v22, %v220_v21  ;;  %v223_v25 = vld [vmem:[#allocation5 + $0x78] sm:$0xff]  ;;  %v224_v27 = vld [vmem:[#allocation5 + $0x80] sm:$0xff]  ;;  %v225_v28 = vld [vmem:[#allocation5 + $0x88] sm:$0xff]  ;;  %s642_s30 = scalar_lea.vmem %s641_s23, 512  ;;  %p643_p10 = scmp.lt.s32.totalorder %s927_s26, %s641_s23 }
  0x5d   : > { %451 = vmatpush1.bf16.msra.mxu0 %v450_v6  ;;  %500 = vmatpush1.bf16.msra.mxu1 %v450_v6  ;;  %v468_v26 = vpack.c.bf16 %v223_v25, %v222_v24  ;;  %v471_v29 = vpack.c.bf16 %v225_v28, %v224_v27  ;;  %v226_v30 = vld [vmem:[#allocation5 + $0x90] sm:$0xff]  ;;  %v227_v31 = vld [vmem:[#allocation5 + $0x98] sm:$0xff]  ;;  %v228_v33 = vld [vmem:[#allocation5 + $0xa0] sm:$0xff]  ;;  %p638_p6 = pnand %p637_p4, %p830_p12  ;;  %p644_p13 = scmp.lt.s32.totalorder %s642_s30, %s636_s28 }
  0x5e   : > { %452 = vmatprep.subr.bf16.mxu0 %v714_v0  ;;  %487 = vmatprep.subr.bf16.mxu1 %v714_v0  ;;  %v474_v32 = vpack.c.bf16 %v227_v31, %v226_v30  ;;  %v229_v34 = vld [vmem:[#allocation5 + $0xa8] sm:$0xff]  ;;  %v230_v36 = vld [vmem:[#allocation5 + $0xb0] sm:$0xff]  ;;  %v231_v37 = vld [vmem:[#allocation5 + $0xb8] sm:$0xff] }
  0x5f   : > { %v477_v35 = vpack.c.bf16 %v229_v34, %v228_v33  ;;  %v480_v38 = vpack.c.bf16 %v231_v37, %v230_v36  ;;  %v232_v39 = vld [vmem:[#allocation5 + $0xc0] sm:$0xff]  ;;  %v233_v40 = vld [vmem:[#allocation5 + $0xc8] sm:$0xff]  ;;  %v234_v43 = vld [vmem:[#allocation5 + $0xd0] sm:$0xff]  ;;  %p639_p8 = pneg %p638_p6  ;;  %p645_p3 = por %p644_p13, %p643_p10 }
  0x60   : > { %v483_v41 = vpack.c.bf16 %v233_v40, %v232_v39  ;;  %v204_v44 = vld [vmem:[%s882_s9] sm:$0xff]  ;;  %v206_v45 = vld [vmem:[%s882_s9 + $0x10] sm:$0xff] }
  0x61   : > { %454 = vmatpush1.bf16.msra.mxu0 %v453_v9  ;;  %501 = vmatpush1.bf16.msra.mxu1 %v453_v9  ;;  %v436_v46 = vld [vmem:[%s978_s2] ss:$0 sm:$0xff]  ;;  %p646_p7 = pnand %p645_p3, %p639_p8 }
  0x62   : > { %455 = vmatprep.subr.bf16.mxu0 %v714_v0  ;;  %488 = vmatprep.subr.bf16.mxu1 %v714_v0 }
  0x65   : > { %457 = vmatpush1.bf16.msra.mxu0 %v456_v14  ;;  %502 = vmatpush1.bf16.msra.mxu1 %v456_v14 }
  0x66   : > { %458 = vmatprep.subr.bf16.mxu0 %v714_v0  ;;  %489 = vmatprep.subr.bf16.mxu1 %v714_v0 }
  0x69   : > { %460 = vmatpush1.bf16.msra.mxu0 %v459_v17  ;;  %503 = vmatpush1.bf16.msra.mxu1 %v459_v17 }
  0x6a   : > { %461 = vmatprep.subr.bf16.mxu0 %v714_v0  ;;  %490 = vmatprep.subr.bf16.mxu1 %v714_v0 }
  0x6d   : > { %463 = vmatpush1.bf16.msra.mxu0 %v462_v20  ;;  %504 = vmatpush1.bf16.msra.mxu1 %v462_v20 }
  0x6e   : > { %464 = vmatprep.subr.bf16.mxu0 %v714_v0  ;;  %491 = vmatprep.subr.bf16.mxu1 %v714_v0 }
  0x71   : > { %466 = vmatpush1.bf16.msra.mxu0 %v465_v23  ;;  %505 = vmatpush1.bf16.msra.mxu1 %v465_v23 }
  0x72   : > { %467 = vmatprep.subr.bf16.mxu0 %v714_v0  ;;  %492 = vmatprep.subr.bf16.mxu1 %v714_v0 }
  0x75   : > { %469 = vmatpush1.bf16.msra.mxu0 %v468_v26  ;;  %506 = vmatpush1.bf16.msra.mxu1 %v468_v26 }
  0x76   : > { %470 = vmatprep.subr.bf16.mxu0 %v714_v0  ;;  %493 = vmatprep.subr.bf16.mxu1 %v714_v0 }
  0x79   : > { %472 = vmatpush1.bf16.msra.mxu0 %v471_v29  ;;  %507 = vmatpush1.bf16.msra.mxu1 %v471_v29 }
  0x7a   : > { %473 = vmatprep.subr.bf16.mxu0 %v714_v0  ;;  %494 = vmatprep.subr.bf16.mxu1 %v714_v0 }
  0x7d   : > { %475 = vmatpush1.bf16.msra.mxu0 %v474_v32  ;;  %508 = vmatpush1.bf16.msra.mxu1 %v474_v32 }
  0x7e   : > { %476 = vmatprep.subr.bf16.mxu0 %v714_v0  ;;  %495 = vmatprep.subr.bf16.mxu1 %v714_v0 }
  0x81   : > { %478 = vmatpush1.bf16.msra.mxu0 %v477_v35  ;;  %509 = vmatpush1.bf16.msra.mxu1 %v477_v35 }
  0x82   : > { %479 = vmatprep.subr.bf16.mxu0 %v714_v0  ;;  %496 = vmatprep.subr.bf16.mxu1 %v714_v0 }
  0x85   : > { %481 = vmatpush1.bf16.msra.mxu0 %v480_v38  ;;  %510 = vmatpush1.bf16.msra.mxu1 %v480_v38 }
  0x86   : > { %482 = vmatprep.subr.bf16.mxu0 %v714_v0  ;;  %497 = vmatprep.subr.bf16.mxu1 %v714_v0 }
  0x89   : > { %484 = vmatpush1.bf16.msra.mxu0 %v483_v41  ;;  %511 = vmatpush1.bf16.msra.mxu1 %v483_v41 }
  0x8a   : > { %301 = vmatprep.subr.mxu0 %v715_v42  ;;  %498 = vmatprep.subr.mxu1 %v715_v42 }
  0x8d   : > { %302 = vmatpush1.msra.mxu0 %v234_v43  ;;  %512 = vmatpush1.msra.mxu1 %v234_v43 }
  0x8e   : > { %314 = vmatmul.mubr.f32.vlgmr.msra.gmra.mrb[0].mxu0 %v204_v44  ;;  %319 = vmatmul.mubr.f32.vlgmr.msra.gmra.mrb[0].mxu1 %v206_v45 }
 0x161   : > { %v315_v47 = vpop.f32.mrb[0].mxu0  ;;  %v320_v48 = vpop.f32.mrb[0].mxu1 }
 0x162   : > { %v316_v49 = vadd.f32 %v436_v46, %v315_v47  ;;  %v321_v50 = vadd.f32 %v436_v46, %v320_v48  ;;  %v317_v51 = vpop.f32.mrb[1].mxu0  ;;  %v322_v52 = vpop.f32.mrb[1].mxu1 }
 0x164   : > { %v324_v53 = vmax.f32 %v316_v49, 0.0  ;;  %v325_v54 = vmax.f32 %v321_v50, 0.0 }
 0x166   : > { %326 = vst [vmem:[%s203_s25] sm:$0xff] %v324_v53  ;;  %327 = vst [vmem:[%s203_s25 + $0x8] sm:$0xff] %v325_v54 }
 0x167   : > { %649 = shalt.err (!%p646_p7)
}
 0x168   : > { %s650_s22 = scalar_lea.hbm %s932_s27, 256  ;;  %s654_s9 = scalar_lea.hbm %s979_s3, 512 }
 0x169   : > { %p651_p9 = scmp.ne.s32.totalorder %s932_s27, %s650_s22  ;;  %p655_p5 = scmp.lt.u32.totalorder %s932_s27, %s979_s3 }
 0x16a   : > { %p656_p11 = scmp.lt.u32.totalorder %s654_s9, %s650_s22  ;;  %p658_p4 = scmp.lt.u32.totalorder %s650_s22, %s932_s27 }
 0x16b   : > { %p652_p2 = pnand %p651_p9, %p830_p12 }
 0x16c   : > { %p657_p1 = por %p656_p11, %p655_p5 }
 0x16d   : > { %p653_p0 = pneg %p652_p2 }
 0x16e   : > { %p659_p6 = por %p658_p4, %p657_p1 }
 0x170   : > { %p660_p8 = pnand %p659_p6, %p653_p0 }
 0x172   : > { %663 = shalt.err (!%p660_p8)
}
 0x173   : > { %s717_s4 = smov 128   ;;  %s718_s25 = smov 8  }
 0x174   : > { %519 = dma.vmem_to_hbm [thread:$0]  (%p830_p12), %s927_s26, 256, %s932_s27, %s329_s16, %s717_s4, %s717_s4, %s718_s25  }
 0x175 PF: > { %s357_s5 = sand.u32 1, %s694_s12   ;;  %p994_p10 = scmp.ne.s32.totalorder %s984_s19, 0 }
 0x176   : > { %p995_p13 = scmp.ge.s32.totalorder %s706_s15, 2  ;;  %s358_s10 = scalar_lea.sflag [#allocation4], %s357_s5 }
 0x178   : > { %p530_p3 = pnand %p995_p13, %p994_p10 }
 0x17a   : > { %689 = dma.done.wait (!%p530_p3), %s358_s10, 256  }
 0x17b   : > { %691 = vsyncadd (!%p530_p3), %s358_s10, 4294967040  ;;  %p17_p7 = scmp.ge.s32.totalorder %s795_s24, 4   ;;  %s996_s12 = smov %s698_s13 }
 0x17c   : > { %s997_s13 = smov %s702_s14  ;;  %s998_s14 = smov %s826_s17 }
 0x17d   : > { %s999_s15 = smov %s795_s24  ;;  %19 = sbr.rel (!%p17_p7) target bundleno = 6 (0x6), region = 81 }
 0x184   :  { %363 = vsyncpa [#allocation3], 1 }
 0x185   :  { %365 = vsyncpa [#allocation3 + $0x1], 1 }
 0x186   :  { %366 = vsyncpa [#allocation6], 1 }
 0x187   :  { %367 = vsyncpa [#allocation4], 1 }
 0x188   :  { %369 = vsyncpa [#allocation4 + $0x1], 1 }

</bundles_post_ra>
